<compile_context>
chip_gen: v7x
topology: tpu7x:2x2x1
jax: 0.10.0
libtpu: 0.0.40
codegen_flags: <defaults>
</compile_context>

<pallas_src>
import functools

import jax
import jax.numpy as jnp
from jax.experimental import pallas as pl
from jax.experimental.pallas import tpu as pltpu

_MAX_LANE = 2048                          # widest lane-dense last dim we try
_DEFAULT_BLOCK_BYTES = 4 * 1024 * 1024    # ~4 MiB per block buffer


def _default_row_semantics():
    try:
        kind = jax.devices()[0].device_kind
    except Exception:  # pragma: no cover
        kind = ""
    # v7x has two TensorCores per chip; CORE_PARALLEL shards the row-block
    # stream across both of them. v5e/v6e are single-TC -> plain "parallel".
    return (pltpu.CORE_PARALLEL,) if "7" in kind else ("parallel",)


_ROW_SEMANTICS = _default_row_semantics()


def _hsigmoid_kernel(x_ref, o_ref):
    x = x_ref[...]
    if not (x.dtype == jnp.float32 or x.dtype == jnp.bfloat16):
        x = x.astype(jnp.float32)               # exotic dtypes: compute in f32
    y = jnp.clip(x + 3.0, 0.0, 6.0) * (1.0 / 6.0)   # relu6(x + 3) * (1/6)
    o_ref[...] = y.astype(o_ref.dtype)


def _round_down(n, m):
    return (n // m) * m


def _pick_lane(total, max_lane):
    """Largest multiple of 128 (<= max_lane) dividing `total`; 0 if none."""
    best = 0
    for lane in range(128, max_lane + 1, 128):
        if total % lane == 0:
            best = lane
    return best


@functools.partial(jax.jit, static_argnames=("max_lane", "block_bytes"))
def hsigmoid(x, *, max_lane=_MAX_LANE, block_bytes=_DEFAULT_BLOCK_BYTES):
    orig_shape = x.shape
    orig_dtype = x.dtype
    total = int(x.size)
    itemsize = x.dtype.itemsize

    lane = _pick_lane(total, max_lane)
    if lane > 0:
        # Fast path: zero-copy reshape to a lane-dense (rows, lane) slab.
        # No padding, no trailing slice -> 1 HBM read + 1 HBM write total.
        pad = 0
        rows = total // lane
    else:
        # Rare fallback (size not a multiple of 128): pad the tail up to the
        # next 128 multiple so stores stay unmasked / lane-dense, slice after.
        # TODO(synk): this pad+slice path costs extra HBM passes; only hit for
        # sizes not divisible by 128 (typically tiny SE-block activations).
        lane = 128
        pad = (-total) % 128
        rows = (total + pad) // lane

    flat = jnp.reshape(x, (-1,))
    if pad:
        flat = jnp.pad(flat, (0, pad))
    slab = jnp.reshape(flat, (rows, lane))

    # Block sizing: ~block_bytes per buffer; rows per block is a sublane
    # multiple (or the full extent). The last grid block may be ragged --
    # Pallas masks its out-of-bounds writeback, so no row padding is needed.
    block_rows = max(1, block_bytes // (lane * itemsize))
    if block_rows < rows:
        block_rows = max(8, _round_down(block_rows, 8))
    if block_rows >= rows:
        block_rows = rows
    grid = (pl.cdiv(rows, block_rows),)

    out = pl.pallas_call(
        _hsigmoid_kernel,
        out_shape=jax.ShapeDtypeStruct((rows, lane), orig_dtype),
        grid=grid,
        in_specs=[pl.BlockSpec((block_rows, lane), lambda i: (i, 0))],
        out_specs=pl.BlockSpec((block_rows, lane), lambda i: (i, 0)),
        compiler_params=pltpu.CompilerParams(
            dimension_semantics=_ROW_SEMANTICS,
            vmem_limit_bytes=32 * 1024 * 1024,   # headroom under v7x's 64 MiB
        ),
    )(slab)

    if pad:
        out = jnp.reshape(out, (-1,))[:total]
    return jnp.reshape(out, orig_shape)


if __name__ == "__main__":
    key = jax.random.PRNGKey(0)
    x = jax.random.normal(key, (2, 4, 16, 16), jnp.float32)

    y = hsigmoid(x)
    jax.block_until_ready(y)

    # reference: relu6(x + 3) / 6
    y_ref = jnp.clip(x + 3.0, 0.0, 6.0) / 6.0
    assert y.shape == x.shape, y.shape
    assert y.dtype == x.dtype, y.dtype
    assert bool(jnp.all(jnp.isfinite(y)))
    assert bool(jnp.allclose(y, y_ref, atol=1e-6, rtol=1e-6))

    # bf16 input, lane-dense fast path (188160 = 98 * 1920, no pad/slice),
    # computed natively in bf16.
    xb = jax.random.normal(jax.random.PRNGKey(1), (4, 960, 7, 7), jnp.bfloat16)
    yb = hsigmoid(xb)
    jax.block_until_ready(yb)
    yb_ref = jnp.clip(xb.astype(jnp.float32) + 3.0, 0.0, 6.0) / 6.0
    assert yb.shape == xb.shape and yb.dtype == jnp.bfloat16
    assert bool(jnp.allclose(yb.astype(jnp.float32), yb_ref, atol=2e-2, rtol=2e-2))

    # Force a multi-block grid with a ragged last block (98 rows / 16-row tiles)
    # to exercise the masked-writeback path.
    yb2 = hsigmoid(xb, block_bytes=64 * 1024)
    jax.block_until_ready(yb2)
    assert bool(jnp.allclose(yb2.astype(jnp.float32), yb_ref, atol=2e-2, rtol=2e-2))

    # Odd element count (not a multiple of 128) exercises the padded fallback.
    xo = jax.random.normal(jax.random.PRNGKey(2), (1, 72, 1, 1), jnp.float32)
    yo = hsigmoid(xo)
    jax.block_until_ready(yo)
    yo_ref = jnp.clip(xo + 3.0, 0.0, 6.0) / 6.0
    assert yo.shape == xo.shape and yo.dtype == xo.dtype
    assert bool(jnp.allclose(yo, yo_ref, atol=1e-6, rtol=1e-6))

    print("KERNEL_OK")
</pallas_src>

<mosaic_0001>
module attributes {stable_mosaic.version = 11 : i64} {
  func.func @_hsigmoid_kernel(%arg0: i32, %arg1: memref<1x2048xf32, #tpu.memory_space<vmem>>, %arg2: memref<1x2048xf32, #tpu.memory_space<vmem>>) attributes {dimension_semantics = [#tpu.dimension_semantics<parallel>], iteration_bounds = array<i64: 1>, scalar_prefetch = 0 : i64, scratch_operands = 0 : i64, tpu.core_type = #tpu.core_type<tc>, window_params = [{transform_indices = @transform_0, window_bounds = array<i64: 1, 2048>}, {transform_indices = @transform_1, window_bounds = array<i64: 1, 2048>}]} {
    %c0 = arith.constant 0 : index
    %c0_0 = arith.constant 0 : index
    %0 = vector.load %arg1[%c0, %c0_0] : memref<1x2048xf32, #tpu.memory_space<vmem>>, vector<1x2048xf32>
    %cst = arith.constant 3.000000e+00 : f32
    %1 = vector.broadcast %cst : f32 to vector<1x2048xf32>
    %2 = arith.addf %0, %1 : vector<1x2048xf32>
    %cst_1 = arith.constant 0.000000e+00 : f32
    %cst_2 = arith.constant 6.000000e+00 : f32
    %3 = vector.broadcast %cst_1 : f32 to vector<1x2048xf32>
    %4 = arith.maximumf %3, %2 : vector<1x2048xf32>
    %5 = vector.broadcast %cst_2 : f32 to vector<1x2048xf32>
    %6 = arith.minimumf %5, %4 : vector<1x2048xf32>
    %cst_3 = arith.constant 0.166666672 : f32
    %7 = vector.broadcast %cst_3 : f32 to vector<1x2048xf32>
    %8 = arith.mulf %6, %7 : vector<1x2048xf32>
    %c0_4 = arith.constant 0 : index
    %c0_5 = arith.constant 0 : index
    %9 = vector.load %arg2[%c0_4, %c0_5] : memref<1x2048xf32, #tpu.memory_space<vmem>>, vector<1x2048xf32>
    tpu.vector_store %arg2[%c0_4, %c0_5], %8 {strides = array<i32>} : memref<1x2048xf32, #tpu.memory_space<vmem>>, vector<1x2048xf32>,
    return
  }
  func.func @transform_0(%arg0: i32) -> (i32, i32) {
    %c0_i32 = arith.constant 0 : i32
    %c0_i32_0 = arith.constant 0 : i32
    return %arg0, %c0_i32 : i32, i32
  }
  func.func @transform_1(%arg0: i32) -> (i32, i32) {
    %c0_i32 = arith.constant 0 : i32
    %c0_i32_0 = arith.constant 0 : i32
    return %arg0, %c0_i32 : i32, i32
  }
}

</mosaic_0001>

<bundles_post_ra>
// kernel: hsigmoid.1
= control target key start
LH: loop header
LB: loop body
LE: loop exit
PB: predicated region body
PF: predicated region fallthrough
CT: control target
= control target key end

     0   :  { %s46_s0 = inlined_call_operand.vmem [shape: f32[1,2048], index: 0, kind: input, shape index: {}]   ;;  %s47_s1 = inlined_call_operand.vmem [shape: f32[1,2048], index: 1, kind: output, shape index: {}]  }
   0x1   :  { %v8_v0 = vld [vmem:[%s46_s0] sm:$0xff]  ;;  %v9_v1 = vld [vmem:[%s46_s0 + $0x8] sm:$0xff] }
   0x2   :  { %v10_v2 = vadd.f32 3.0, %v8_v0  ;;  %v11_v3 = vadd.f32 3.0, %v9_v1 }
   0x4   :  { %v12_v4 = vmax.f32 %v10_v2, 0.0  ;;  %v13_v5 = vmax.f32 %v11_v3, 0.0 }
   0x6   :  { %v14_v6 = vmin.f32 %v12_v4, 6.0  ;;  %v15_v7 = vmin.f32 %v13_v5, 6.0 }
   0x8   :  { %v16_v8 = vmul.f32 0.16666667, %v14_v6  ;;  %v17_v9 = vmul.f32 0.16666667, %v15_v7 }
   0xa   :  { %18 = vst [vmem:[%s47_s1] sm:$0xff] %v16_v8  ;;  %19 = vst [vmem:[%s47_s1 + $0x8] sm:$0xff] %v17_v9 }

</bundles_post_ra>
